<compile_context>
chip_gen: v7x
topology: tpu7x:2x2x1
jax: 0.10.0
libtpu: 0.0.40
codegen_flags: <defaults>
</compile_context>

<pallas_src>
import jax
import jax.numpy as jnp
from jax import lax
from jax.experimental import pallas as pl
from jax.experimental.pallas import tpu as pltpu


def _make_linear3d_kernel(C, tk, mask_k):
    def kernel(x_ref, w_ref, b_ref, o_ref, acc_ref):
        # x_ref: (tk, ts) channels x spatial-in-lanes
        # w_ref: (tn, tk)  PyTorch (out_features, in_features) layout
        # b_ref: (tn, 1)
        # o_ref: (tn, ts)
        # acc_ref: (tn, ts) f32 scratch, persists across the K sweep
        k = pl.program_id(3)

        @pl.when(k == 0)
        def _():
            acc_ref[...] = jnp.zeros_like(acc_ref)

        x = x_ref[...]
        w = w_ref[...]
        if mask_k:
            # Ragged last C block: zero the padded rows/cols so garbage
            # (possibly NaN) in the partial block never hits the accumulator.
            c_row = k * tk + lax.broadcasted_iota(jnp.int32, (tk, 1), 0)
            c_col = k * tk + lax.broadcasted_iota(jnp.int32, (1, tk), 1)
            x = jnp.where(c_row < C, x, 0)
            w = jnp.where(c_col < C, w, 0)

        acc_ref[...] += jnp.dot(w, x, preferred_element_type=jnp.float32)

        @pl.when(k == pl.num_programs(3) - 1)
        def _():
            o_ref[...] = (acc_ref[...]
                          + b_ref[...].astype(jnp.float32)).astype(o_ref.dtype)

    return kernel


def _vmem_capacity_bytes():
    try:
        return int(pltpu.get_tpu_info().vmem_capacity_bytes)
    except Exception:
        return 64 * 1024 * 1024  # conservative fallback: v7x per-TC VMEM


def _footprint_bytes(tk, ts, tn, x_item, w_item):
    return (2 * tk * ts * x_item        # x tile (double-buffered)
            + 2 * tn * tk * w_item      # weight tile
            + 2 * tn * w_item           # bias tile
            + 2 * tn * ts * x_item      # output tile
            + tn * ts * 4)              # f32 accumulator scratch


def _choose_tiles(C, F, S, x_item, w_item, budget):
    # Output-feature tile: full extent when small, else 256 (MXU-friendly).
    tn = F if F <= 256 else 256
    # Contraction tile: full C if it fits one tile, else a multiple of 128.
    tk = C if C <= 1024 else 512
    # Spatial (lane) tile: bigger when C is small (purely HBM-bound), always a
    # multiple of 128 unless it spans the full extent.
    ts_pref = 4096 if C <= 32 else (2048 if C <= 128 else 1024)
    if S <= ts_pref:
        ts, ts_shrinkable = S, False
    else:
        ts, ts_shrinkable = ts_pref, True

    # Shrink until the double-buffered footprint fits the budget (ts, tn, tk).
    while _footprint_bytes(tk, ts, tn, x_item, w_item) > budget:
        if ts_shrinkable and ts >= 512 and ts % 256 == 0:
            ts //= 2
        elif tn > 128 and tn % 16 == 0:
            tn //= 2
        elif tk > 512 and tk % 256 == 0:
            tk //= 2
        else:
            break
    return tk, ts, tn


def linear3d_pallas(x, weight, bias, *, ts=None, tn=None, tk=None):
    """Linear3D forward.

    x: (N, C, D, H, W); weight: (F, C) [PyTorch layout]; bias: (F,).
    Returns (N, F, D, H, W).  ts/tn/tk override the auto tile selection.
    """
    N, C, D, H, W = x.shape
    F = weight.shape[0]
    S = D * H * W

    # Free (contiguous) reshapes only -- no transposes, no padding copies.
    x3 = x.reshape(N, C, S)
    b2 = bias.reshape(F, 1)

    x_item = jnp.dtype(x.dtype).itemsize
    w_item = jnp.dtype(weight.dtype).itemsize

    vmem_cap = _vmem_capacity_bytes()
    budget = int(0.70 * vmem_cap)
    a_tk, a_ts, a_tn = _choose_tiles(C, F, S, x_item, w_item, budget)
    tk = a_tk if tk is None else tk
    ts = a_ts if ts is None else ts
    tn = a_tn if tn is None else tn
    est_bytes = _footprint_bytes(tk, ts, tn, x_item, w_item)

    grid = (N, pl.cdiv(S, ts), pl.cdiv(F, tn), pl.cdiv(C, tk))
    kernel = _make_linear3d_kernel(C, tk, mask_k=(C % tk != 0))

    # Scoped-VMEM limit: always set explicitly (v5e default is only 16 MiB),
    # with headroom for the compiler's internal scratch, capped per-generation.
    vmem_limit = int(min(max(est_bytes + (4 << 20), 16 << 20),
                         int(0.85 * vmem_cap)))

    cost = pl.CostEstimate(
        flops=2 * N * F * S * C,
        transcendentals=0,
        bytes_accessed=(N * C * S * x_item + F * C * w_item + F * w_item
                        + N * F * S * x_item),
    )

    out3 = pl.pallas_call(
        kernel,
        out_shape=jax.ShapeDtypeStruct((N, F, S), x.dtype),
        grid_spec=pltpu.PrefetchScalarGridSpec(
            num_scalar_prefetch=0,
            grid=grid,
            in_specs=[
                # x block (1 -> squeezed, tk, ts): constant across the inner
                # F sweep -> not re-DMA'd per output tile (when C fits one tk).
                pl.BlockSpec((None, tk, ts), lambda n, s, f, k: (n, k, s)),
                # weight block (tn, tk): the only operand re-fetched per step.
                pl.BlockSpec((tn, tk), lambda n, s, f, k: (f, k)),
                # bias block (tn, 1): added once, at the last K step.
                pl.BlockSpec((tn, 1), lambda n, s, f, k: (f, 0)),
            ],
            out_specs=pl.BlockSpec((None, tn, ts), lambda n, s, f, k: (n, f, s)),
            scratch_shapes=[pltpu.VMEM((tn, ts), jnp.float32)],
        ),
        compiler_params=pltpu.CompilerParams(
            dimension_semantics=("parallel", "parallel", "parallel", "arbitrary"),
            vmem_limit_bytes=vmem_limit,
        ),
        cost_estimate=cost,
    )(x3, weight, b2)

    # Free reshape back to NFDHW (already channel-major, spatial-minor).
    return out3.reshape(N, F, D, H, W)


def _reference(x, weight, bias):
    return jnp.einsum('ncdhw,fc->nfdhw', x, weight) + bias[None, :, None, None, None]


if __name__ == "__main__":
    key = jax.random.PRNGKey(0)

    # --- Case 1: small shapes matching the module's forward (NCDHW input). ---
    N, C, D, H, W, F = 2, 4, 4, 4, 4, 8
    k1, k2, k3, key = jax.random.split(key, 4)
    x = jax.random.normal(k1, (N, C, D, H, W), dtype=jnp.float32)
    bound = 1.0 / (C ** 0.5)
    weight = jax.random.uniform(k2, (F, C), minval=-bound, maxval=bound,
                                dtype=jnp.float32)
    bias = jax.random.uniform(k3, (F,), minval=-bound, maxval=bound,
                              dtype=jnp.float32)
    out = jax.block_until_ready(linear3d_pallas(x, weight, bias))
    assert out.shape == (N, F, D, H, W), out.shape
    assert jnp.allclose(out, _reference(x, weight, bias), atol=1e-5, rtol=1e-5)

    # --- Case 2: multi-tile grid (S/F tiles + ragged-K accumulation path). ---
    N, C, D, H, W, F = 1, 192, 4, 8, 8, 16   # S = 256, C % tk != 0 with tk=128
    k1, k2, k3, key = jax.random.split(key, 4)
    x = jax.random.normal(k1, (N, C, D, H, W), dtype=jnp.float32)
    bound = 1.0 / (C ** 0.5)
    weight = jax.random.uniform(k2, (F, C), minval=-bound, maxval=bound,
                                dtype=jnp.float32)
    bias = jax.random.uniform(k3, (F,), minval=-bound, maxval=bound,
                              dtype=jnp.float32)
    out = jax.block_until_ready(
        linear3d_pallas(x, weight, bias, ts=128, tn=8, tk=128))
    assert out.shape == (N, F, D, H, W), out.shape
    assert jnp.allclose(out, _reference(x, weight, bias), atol=1e-4, rtol=1e-4)

    print("KERNEL_OK")
</pallas_src>

<mosaic_0001>
module attributes {stable_mosaic.version = 11 : i64} {
  func.func @kernel(%arg0: i32, %arg1: i32, %arg2: i32, %arg3: i32, %arg4: memref<1x4x64xf32, #tpu.memory_space<vmem>>, %arg5: memref<8x4xf32, #tpu.memory_space<vmem>>, %arg6: memref<8x1xf32, #tpu.memory_space<vmem>>, %arg7: memref<1x8x64xf32, #tpu.memory_space<vmem>>, %arg8: memref<8x64xf32, #tpu.memory_space<vmem>>) attributes {dimension_semantics = [#tpu.dimension_semantics<parallel>, #tpu.dimension_semantics<parallel>, #tpu.dimension_semantics<parallel>, #tpu.dimension_semantics<arbitrary>], iteration_bounds = array<i64: 2, 1, 1, 1>, scalar_prefetch = 0 : i64, scratch_operands = 1 : i64, tpu.core_type = #tpu.core_type<tc>, window_params = [{transform_indices = @transform_0, window_bounds = array<i64: 1, 4, 64>}, {transform_indices = @transform_1, window_bounds = array<i64: 8, 4>}, {transform_indices = @transform_2, window_bounds = array<i64: 8, 1>}, {transform_indices = @transform_3, window_bounds = array<i64: 1, 8, 64>}]} {
    %c0_i32 = arith.constant 0 : i32
    %0 = arith.cmpi eq, %arg3, %c0_i32 : i32
    %1 = arith.extui %0 : i1 to i32
    %c0_i32_0 = arith.constant 0 : i32
    %2 = arith.cmpi ne, %1, %c0_i32_0 : i32
    scf.if %2 {
      %cst_11 = arith.constant 0.000000e+00 : f32
      %13 = vector.broadcast %cst_11 : f32 to vector<8x64xf32>
      %c0_12 = arith.constant 0 : index
      %c0_13 = arith.constant 0 : index
      %14 = vector.load %arg8[%c0_12, %c0_13] : memref<8x64xf32, #tpu.memory_space<vmem>>, vector<8x64xf32>
      tpu.vector_store %arg8[%c0_12, %c0_13], %13 {strides = array<i32>} : memref<8x64xf32, #tpu.memory_space<vmem>>, vector<8x64xf32>,
    } else {
    }
    %c0 = arith.constant 0 : index
    %c0_1 = arith.constant 0 : index
    %c0_2 = arith.constant 0 : index
    %3 = vector.load %arg4[%c0, %c0_1, %c0_2] : memref<1x4x64xf32, #tpu.memory_space<vmem>>, vector<1x4x64xf32>
    %4 = vector.shape_cast %3 : vector<1x4x64xf32> to vector<4x64xf32>
    %c0_3 = arith.constant 0 : index
    %c0_4 = arith.constant 0 : index
    %5 = vector.load %arg5[%c0_3, %c0_4] : memref<8x4xf32, #tpu.memory_space<vmem>>, vector<8x4xf32>
    %c0_5 = arith.constant 0 : index
    %c0_6 = arith.constant 0 : index
    %6 = vector.load %arg8[%c0_5, %c0_6] : memref<8x64xf32, #tpu.memory_space<vmem>>, vector<8x64xf32>
    %cst = arith.constant dense<0.000000e+00> : vector<8x64xf32>
    %7 = tpu.matmul %5, %4, %cst {dimension_numbers = #tpu.dot_dimension_numbers<[1], [0], [0], [1], [0, 0, 1, 1], [], []>} : vector<8x4xf32>, vector<4x64xf32>, vector<8x64xf32> -> vector<8x64xf32>
    %8 = arith.addf %6, %7 : vector<8x64xf32>
    %c0_7 = arith.constant 0 : index
    %c0_8 = arith.constant 0 : index
    %9 = vector.load %arg8[%c0_7, %c0_8] : memref<8x64xf32, #tpu.memory_space<vmem>>, vector<8x64xf32>
    tpu.vector_store %arg8[%c0_7, %c0_8], %8 {strides = array<i32>} : memref<8x64xf32, #tpu.memory_space<vmem>>, vector<8x64xf32>,
    %c0_i32_9 = arith.constant 0 : i32
    %10 = arith.cmpi eq, %arg3, %c0_i32_9 : i32
    %11 = arith.extui %10 : i1 to i32
    %c0_i32_10 = arith.constant 0 : i32
    %12 = arith.cmpi ne, %11, %c0_i32_10 : i32
    scf.if %12 {
      %c0_11 = arith.constant 0 : index
      %c0_12 = arith.constant 0 : index
      %13 = vector.load %arg8[%c0_11, %c0_12] : memref<8x64xf32, #tpu.memory_space<vmem>>, vector<8x64xf32>
      %c0_13 = arith.constant 0 : index
      %c0_14 = arith.constant 0 : index
      %14 = vector.load %arg6[%c0_13, %c0_14] : memref<8x1xf32, #tpu.memory_space<vmem>>, vector<8x1xf32>
      %15 = vector.broadcast %14 : vector<8x1xf32> to vector<8x64xf32>
      %16 = arith.addf %13, %15 : vector<8x64xf32>
      %c0_15 = arith.constant 0 : index
      %c0_16 = arith.constant 0 : index
      %c0_17 = arith.constant 0 : index
      %17 = vector.load %arg7[%c0_15, %c0_16, %c0_17] : memref<1x8x64xf32, #tpu.memory_space<vmem>>, vector<1x8x64xf32>
      %18 = vector.shape_cast %17 : vector<1x8x64xf32> to vector<8x64xf32>
      %19 = vector.shape_cast %16 : vector<8x64xf32> to vector<1x8x64xf32>
      tpu.vector_store %arg7[%c0_15, %c0_16, %c0_17], %19 {strides = array<i32>} : memref<1x8x64xf32, #tpu.memory_space<vmem>>, vector<1x8x64xf32>,
    } else {
    }
    return
  }
  func.func @transform_0(%arg0: i32, %arg1: i32, %arg2: i32, %arg3: i32) -> (i32, i32, i32) {
    %c0_i32 = arith.constant 0 : i32
    return %arg0, %arg3, %arg1 : i32, i32, i32
  }
  func.func @transform_1(%arg0: i32, %arg1: i32, %arg2: i32, %arg3: i32) -> (i32, i32) {
    %c0_i32 = arith.constant 0 : i32
    return %arg2, %arg3 : i32, i32
  }
  func.func @transform_2(%arg0: i32, %arg1: i32, %arg2: i32, %arg3: i32) -> (i32, i32) {
    %c0_i32 = arith.constant 0 : i32
    %c0_i32_0 = arith.constant 0 : i32
    return %arg2, %c0_i32 : i32, i32
  }
  func.func @transform_3(%arg0: i32, %arg1: i32, %arg2: i32, %arg3: i32) -> (i32, i32, i32) {
    %c0_i32 = arith.constant 0 : i32
    return %arg0, %arg2, %arg1 : i32, i32, i32
  }
}

</mosaic_0001>

<bundles_post_ra>
// kernel: tpu_custom_call.1
= control target key start
LH: loop header
LB: loop body
LE: loop exit
PB: predicated region body
PF: predicated region fallthrough
CT: control target
= control target key end

     0   :  { %8 = vsyncpa [#allocation4], 0  ;;  %s801_s0 = inlined_call_operand.vmem [shape: f32[2,4,64], index: 0, kind: input, shape index: {}]   ;;  %s802_s1 = inlined_call_operand.vmem [shape: f32[8,4], index: 1, kind: input, shape index: {}]   ;;  %s803_s2 = inlined_call_operand.vmem [shape: f32[8,1], index: 2, kind: input, shape index: {}]   ;;  %s804_s3 = inlined_call_operand.hbm [shape: f32[2,8,64], index: 3, kind: output, shape index: {}]  }
   0x1   :  { %10 = vsyncpa [#allocation4 + $0x1], 0  ;;  %s680_s12 = smov 0   ;;  %s682_s13 = smov 0  }
   0x2   :  { %s684_s14 = smov 0   ;;  %s686_s15 = smov 0  }
   0x3   :  { %s688_s16 = smov 0   ;;  %s690_s17 = smov 0  }
   0x4 LB: > { %s495_s18 = sadd.s32 4294967295, %s654_s17   ;;  %s496_s19 = sadd.s32 4294967294, %s654_s17   ;;  %s654_s17 = sphi %s690_s17, %s16_s17   ;;  %s650_s16 = sphi %s688_s16, %s811_s16   ;;  %s646_s15 = sphi %s686_s15, %s810_s15   ;;  %s642_s14 = sphi %s684_s14, %s809_s14   ;;  %s638_s13 = sphi %s682_s13, %s808_s13   ;;  %s634_s12 = sphi %s680_s12, %s807_s12  }
   0x5   : > { %s42_s20 = sadd.s32 1, %s650_s16  ;;  %s137_s21 = sadd.s32 1, %s642_s14 }
   0x6   : > { %p44_p0 = scmp.ge.s32.totalorder %s42_s20, 2  ;;  %p147_p1 = scmp.ne.s32.totalorder %s642_s14, %s638_s13 }
   0x7   : > { %p148_p2 = scmp.eq.s32.totalorder %s495_s18, 1  ;;  %p153_p3 = scmp.ne.s32.totalorder %s638_s13, %s634_s12 }
   0x8   : > { %s813_s20 = smov (%p44_p0, %s42_s20), 0  ;;  %p154_p5 = scmp.eq.s32.totalorder %s496_s19, 1 }
   0x9   : > { %p720_p4 = por %p148_p2, %p147_p1  ;;  %s130_s23 = ssub.s32 %s650_s16, %s813_s20 }
   0xa   : > { %p501_p6 = scmp.ge.s32.totalorder %s654_s17, 1  ;;  %p135_p7 = scmp.eq.s32.totalorder %s130_s23, 0 }
   0xb   : > { %p727_p8 = por %p154_p5, %p153_p3  ;;  %p202_p9 = scmp.lt.s32.totalorder %s654_s17, 3 }
   0xc   : > { %s733_s25 = scalar_select %p135_p7, %s642_s14, %s137_s21  }
   0xd   : > { %p203_p10 = pnand %p501_p6, %p202_p9 }
   0xe   : > { %vm267_vm0 = vcmask (!%p203_p10), 523264   ;;  %p242_p11 = scmp.lt.s32.totalorder (!%p203_p10), %s646_s15, 1  ;;  %v656_v0 = vmov (!%p203_p10), 0.0   ;;  %vm657_vm1 = vmmov (!%p203_p10), 0   ;;  %v357_v1 = vld [vmem:[%s803_s2] sm:$0xff] (!%p203_p10)  ;;  %v658_v2 = vmov (!%p203_p10), 0  }
   0xf   : > { %206 = sbr.rel (%p203_p10) target bundleno = 266 (0x10a), region = 32  ;;  %268 = vst.msk [vmem:[#allocation2] sm:$0xff] (!%p203_p10), %vm267_vm0, %v656_v0  ;;  %512 = vmatprep.subr.mxu0 (!%p203_p10), %v656_v0  ;;  %514 = vmatprep.mubr.msk.f32.mxu0 (!%p203_p10), %vm657_vm1, %v656_v0  ;;  %vm276_vm2 = vcmask (!%p203_p10), 1043456   ;;  %v270_v3 = vld [vmem:[%s802_s1] sm:$0xff] (!%p203_p10)  ;;  %vm272_vm3 = vcmask (!%p203_p10), 31744   ;;  %s239_s8 = sand.u32 (!%p203_p10), 1, %s638_s13  }
  0x10   : > { %575 = vset.pattern.permute.xlu0 (!%p203_p10), %v658_v2  ;;  %s502_s9 = sshll.u32 (!%p203_p10), %s239_s8, 3  ;;  %s507_s10 = sshll.u32 (!%p203_p10), %s646_s15, 7 }
  0x11   : > { %360 = vperm.xlu0 (!%p203_p10), %575, %v357_v1   ;;  %s241_s11 = scalar_lea.vmem (!%p203_p10), [#allocation3], %s502_s9  ;;  %s753_s23 = scalar_lea.hbm (!%p203_p10), %s804_s3, %s507_s10 }
  0x12   : > { %s381_s18 = sshll.u32 (!%p203_p10), %s241_s11, 4  ;;  %s366_s26 = scalar_lea.sflag (!%p203_p10), [#allocation4], %s239_s8  ;;  %s755_s18 = int_to_ptr.vmem [resolvable:$true] %s381_s18 }
  0x13   : > { %s576_s27 = scalar_lea.vmem (!%p203_p10), %s755_s18, 128 }
  0x14   : > { %p577_p12 = scmp.ne.s32.totalorder (!%p203_p10), %s755_s18, %s576_s27 }
  0x16   : > { %s243_s28 = scalar_select %p242_p11, %s646_s15, 1  ;;  %v271_v5 = vld [vmem:[#allocation2] sm:$0xff] }
  0x17   : > { %p578_p13 = pnand %p577_p12, %p720_p4  ;;  %s659_s15 = smov [#allocation3]  }
  0x18   : > { %s503_s29 = sshll.u32 %s243_s28, 2  ;;  %s580_s28 = sshll.u32 %s659_s15, 4  ;;  %s581_s28 = int_to_ptr.vmem [resolvable:$false] %s580_s28 }
  0x19   : > { %s251_s5 = scalar_lea.vmem %s801_s0, %s503_s29  ;;  %p579_p0 = pneg %p578_p13 }
  0x1a   : > { %v269_v4 = vld [vmem:[%s251_s5] sm:$0xf]  ;;  %s582_s29 = scalar_lea.vmem %s581_s28, 256  ;;  %p583_p1 = scmp.lt.s32.totalorder %s755_s18, %s581_s28 }
  0x1b   : > { %513 = vmatpush3.msk.msra.mxu0 %vm276_vm2, %v269_v4  ;;  %p584_p2 = scmp.lt.s32.totalorder %s582_s29, %s576_s27 }
  0x1c   : > { %515 = vmatmul.mubr.msk.f32.vlgmr.msra.gmra.mrb[0].mxu0 %vm272_vm3, %v270_v3 }
  0x1d   : > { %p585_p3 = por %p584_p2, %p583_p1 }
  0x1f   : > { %p586_p5 = pnand %p585_p3, %p579_p0 }
  0x90   : > { %v361_v9 = vpop.permute.xlu0 %360 }
  0xef   : > { %v346_v6 = vpop.f32.mrb[0].mxu0 }
  0xf0   : > { %v350_v7 = vadd.f32 %v346_v6, %v271_v5  ;;  %v516_v8 = vpop.f32.mrb[1].mxu0 }
  0xf2   : > { %352 = vst.msk [vmem:[#allocation2] sm:$0xff] %vm267_vm0, %v350_v7 }
  0xf9   : > { %v356_v10 = vld [vmem:[#allocation2] sm:$0xff] }
  0xfa   : > { %v363_v11 = vadd.f32 %v361_v9, %v356_v10 }
  0xfc   : > { %364 = vst.msk [vmem:[%s241_s11] sm:$0xff] %vm267_vm0, %v363_v11 }
  0xfd   : > { %589 = shalt.err (!%p586_p5)
}
  0xfe   : > { %s590_s30 = scalar_lea.hbm %s753_s23, 128  ;;  %s594_s6 = scalar_lea.hbm %s804_s3, 256 }
  0xff   : > { %p591_p6 = scmp.ne.s32.totalorder %s753_s23, %s590_s30  ;;  %p595_p10 = scmp.lt.u32.totalorder %s753_s23, %s804_s3 }
 0x100   : > { %p596_p11 = scmp.lt.u32.totalorder %s594_s6, %s590_s30  ;;  %p598_p13 = scmp.lt.u32.totalorder %s590_s30, %s753_s23 }
 0x101   : > { %p592_p7 = pnand %p591_p6, %p720_p4 }
 0x102   : > { %p597_p12 = por %p596_p11, %p595_p10 }
 0x103   : > { %p593_p9 = pneg %p592_p7 }
 0x104   : > { %p599_p0 = por %p598_p13, %p597_p12 }
 0x106   : > { %p600_p1 = pnand %p599_p0, %p593_p9 }
 0x108   : > { %603 = shalt.err (!%p600_p1)
}
 0x109   : > { %517 = dma.vmem_to_hbm [thread:$0]  (%p720_p4), %s755_s18, 128, %s753_s23, %s366_s26  }
 0x10a PF: > { %p523_p2 = scmp.ge.s32.totalorder %s654_s17, 2  ;;  %s393_s9 = sand.u32 1, %s634_s12  }
 0x10b   : > { %s394_s10 = scalar_lea.sflag [#allocation4], %s393_s9 }
 0x10c   : > { %p520_p3 = pnand %p523_p2, %p727_p8 }
 0x10e   : > { %629 = dma.done.wait (!%p520_p3), %s394_s10, 128  }
 0x10f   : > { %631 = vsyncadd (!%p520_p3), %s394_s10, 4294967168  ;;  %s16_s17 = sadd.s32 1, %s654_s17   ;;  %s807_s12 = smov %s638_s13 }
 0x110   : > { %p13_p5 = scmp.ge.s32.totalorder %s16_s17, 4   ;;  %s808_s13 = smov %s642_s14 }
 0x111   : > { %s809_s14 = smov %s733_s25  ;;  %s810_s15 = smov %s650_s16 }
 0x112   : > { %s811_s16 = smov %s813_s20  ;;  %15 = sbr.rel (!%p13_p5) target bundleno = 4 (0x4), region = 81 }
 0x119   :  { %399 = vsyncpa [#allocation4], 1 }
 0x11a   :  { %401 = vsyncpa [#allocation4 + $0x1], 1 }

</bundles_post_ra>
